<compile_context>
chip_gen: v5e
topology: v5e:2x2
jax: 0.10.0
libtpu: 0.0.40
codegen_flags: <defaults>
</compile_context>

<pallas_src>
import jax
import jax.numpy as jnp
from jax.experimental import pallas as pl
from jax.experimental.pallas import tpu as pltpu


def autopad(k, p=None):
    if p is None:
        p = k // 2 if isinstance(k, int) else [x // 2 for x in k]
    return p


def _round_up(x, m):
    return (x + m - 1) // m * m


def _vmem_limit_bytes():
    """~75% of physical VMEM: ~96 MiB on v5e/v6e (128 MiB), ~48 MiB on v7x (64 MiB)."""
    try:
        cap = pltpu.get_tpu_info().vmem_capacity_bytes
    except Exception:
        cap = 64 * 1024 * 1024
    return int(min(96 * 1024 * 1024, (cap * 3) // 4))


def _pick_row_tile(hw, n):
    """Row tile (MXU M dim).

    Prefer >= 512 rows (per-grid-step overhead ~0.35us; 128-row tiles reach
    ~29% of HBM roofline vs ~85% at 512), prefer tiles that divide HW exactly
    (no extra pad pass over the k*k-expanded tensor), and keep
    n * (HW / TR) >= 2 grid steps so both v7x TensorCores get work.
    """
    if hw <= 128:
        return _round_up(hw, 8)
    for tr in (1024, 512, 256, 128):          # exact divisors first (no pad pass)
        if tr <= hw and hw % tr == 0 and n * (hw // tr) >= 2:
            return tr
    for tr in (1024, 512, 256, 128):          # then allow a padded last tile
        if tr <= hw and n * pl.cdiv(hw, tr) >= 2:
            return tr
    return _round_up(min(hw, 512), 8)


def _matmul_shift_hswish_kernel(x_ref, w_ref, shift_ref, o_ref):
    """One (batch, row-tile) block per grid step.

    x_ref:     (1, TR, KK)        bf16 im2col patch rows (KK = k*k*Cin, unpadded)
    w_ref:     (KK, Cout_pad)     bf16 weights with the BN scale pre-folded in
    shift_ref: (1, Cout_pad)      f32  folded BN shift (beta - mean*scale)
    o_ref:     (1, TR, Cout_pad)  bf16 output rows (lane-dense, unmasked stores)
    """
    # Single deep-contraction MXU matmul, f32 accumulate.
    acc = jnp.dot(x_ref[0], w_ref[...], preferred_element_type=jnp.float32)
    # Fused BN shift + Hardswish:  y * relu6(y + 3) / 6   (f32 VPU epilogue)
    y = acc + shift_ref[...]
    y = y * jnp.clip(y + 3.0, 0.0, 6.0) * (1.0 / 6.0)
    o_ref[0] = y.astype(o_ref.dtype)


def _pallas_conv_call(x_cols, w, shift, *, N, HW_pad, TR, KK, Cout_pad,
                      vmem_limit, single_buffer_consts):
    # Grid-invariant operands (constant index_map) are never re-fetched; a
    # second pipeline buffer for them is pure VMEM waste (matters for large
    # Cout, especially on v7x's 64 MiB VMEM) -> request single buffering.
    const_kw = {"pipeline_mode": pl.Buffered(1)} if single_buffer_consts else {}
    in_specs = [
        # x block keeps the default double buffering so its DMA overlaps compute.
        pl.BlockSpec((1, TR, KK), lambda n, r: (n, r, 0)),
        pl.BlockSpec((KK, Cout_pad), lambda n, r: (0, 0), **const_kw),
        pl.BlockSpec((1, Cout_pad), lambda n, r: (0, 0), **const_kw),
    ]
    return pl.pallas_call(
        _matmul_shift_hswish_kernel,
        out_shape=jax.ShapeDtypeStruct((N, HW_pad, Cout_pad), jnp.bfloat16),
        grid_spec=pltpu.PrefetchScalarGridSpec(
            num_scalar_prefetch=0,
            grid=(N, HW_pad // TR),
            in_specs=in_specs,
            out_specs=pl.BlockSpec((1, TR, Cout_pad), lambda n, r: (n, r, 0)),
        ),
        compiler_params=pltpu.CompilerParams(
            dimension_semantics=("parallel", "parallel"),
            vmem_limit_bytes=vmem_limit),
    )(x_cols, w, shift)


def conv_bn_hswish(x_nchw, weight_oihw, gamma, beta, run_mean, run_var,
                   *, k=3, s=1, p=None, eps=1e-5, out_dtype=jnp.float32):
    if not isinstance(k, int):
        raise NotImplementedError("non-square kernel sizes are not supported")
    pad = autopad(k, p)
    N, Cin, H, W = x_nchw.shape
    Cout = weight_oihw.shape[0]
    Hout = (H + 2 * pad - k) // s + 1
    Wout = (W + 2 * pad - k) // s + 1
    HW = Hout * Wout
    KK = k * k * Cin

    # ---- im2col in bf16 (cast BEFORE the k*k expansion => half the expanded
    # intermediate's HBM bytes), contraction dim left unpadded. ---------------
    x_nhwc = jnp.transpose(x_nchw.astype(jnp.bfloat16), (0, 2, 3, 1))
    x_pad = jnp.pad(x_nhwc, ((0, 0), (pad, pad), (pad, pad), (0, 0)))
    cols = []
    for kh in range(k):
        for kw in range(k):
            cols.append(jax.lax.slice(
                x_pad,
                (0, kh, kw, 0),
                (N, kh + s * (Hout - 1) + 1, kw + s * (Wout - 1) + 1, Cin),
                (1, s, s, 1)))
    # (N, HW, K*K*Cin) with tap order (kh, kw, cin) -- matches weight reshape.
    x_cols = jnp.concatenate(cols, axis=-1).reshape(N, HW, KK)

    # ---- tiling --------------------------------------------------------------
    # Cout lane padding: 128 for small layers, 256-aligned once Cout >= 256 so
    # the 2x256^2 MXUs on v6e/v7x are fully fed (v5e is 128-wide anyway).
    Cout_pad = _round_up(Cout, 256 if Cout >= 256 else 128)
    TR = _pick_row_tile(HW, N)
    vmem_limit = _vmem_limit_bytes()

    def _vmem_est(tr):            # double-buffered x/out + weight block + shift
        return (2 * tr * KK * 2 + 2 * KK * Cout_pad * 2
                + 2 * tr * Cout_pad * 2 + 2 * Cout_pad * 4)

    while TR > 128 and _vmem_est(TR) > (vmem_limit * 3) // 5:
        TR //= 2                  # keep working set comfortably inside VMEM (v7x)

    HW_pad = pl.cdiv(HW, TR) * TR
    if HW_pad != HW:              # only when no exact-divisor tile was available
        x_cols = jnp.pad(x_cols, ((0, 0), (0, HW_pad - HW), (0, 0)))

    # ---- weights: fold BN scale into columns, lane-pad Cout, cast bf16 -------
    scale = gamma.astype(jnp.float32) / jnp.sqrt(run_var.astype(jnp.float32) + eps)
    shift = beta.astype(jnp.float32) - run_mean.astype(jnp.float32) * scale
    # OIHW -> (K, K, Cin, Cout) -> (K*K*Cin, Cout), matching im2col tap order.
    w = jnp.transpose(weight_oihw, (2, 3, 1, 0)).reshape(KK, Cout)
    w = w.astype(jnp.float32) * scale[None, :]
    w = jnp.pad(w, ((0, 0), (0, Cout_pad - Cout))).astype(jnp.bfloat16)
    shift = jnp.pad(shift, (0, Cout_pad - Cout)).reshape(1, Cout_pad)

    kwargs = dict(N=N, HW_pad=HW_pad, TR=TR, KK=KK, Cout_pad=Cout_pad,
                  vmem_limit=vmem_limit)
    try:
        out = _pallas_conv_call(x_cols, w, shift, single_buffer_consts=True,
                                **kwargs)
    except Exception:
        # pipeline_mode=pl.Buffered(1) not supported on this JAX version; only
        # cost is a doubled VMEM footprint for the grid-invariant operands.
        out = _pallas_conv_call(x_cols, w, shift, single_buffer_consts=False,
                                **kwargs)

    # Strip padding, restore the module's (N, Cout, H, W) f32 contract.
    # TODO(synk): keep channel-last / bf16 when chaining several Conv blocks.
    out = out[:, :HW, :Cout].reshape(N, Hout, Wout, Cout)
    return jnp.transpose(out, (0, 3, 1, 2)).astype(out_dtype)


def _reference(x_nchw, weight_oihw, gamma, beta, run_mean, run_var,
               *, k=3, s=1, p=None, eps=1e-5):
    """Plain-JAX reference (lax conv + eval BN + hardswish) for validation."""
    pad = autopad(k, p)
    y = jax.lax.conv_general_dilated(
        x_nchw.astype(jnp.float32), weight_oihw.astype(jnp.float32),
        window_strides=(s, s), padding=[(pad, pad), (pad, pad)],
        dimension_numbers=("NCHW", "OIHW", "NCHW"))
    sc = (gamma / jnp.sqrt(run_var + eps)).reshape(1, -1, 1, 1)
    sh = (beta - run_mean * (gamma / jnp.sqrt(run_var + eps))).reshape(1, -1, 1, 1)
    y = y * sc + sh
    return y * jnp.clip(y + 3.0, 0.0, 6.0) / 6.0


if __name__ == "__main__":
    key = jax.random.PRNGKey(0)
    kx, kw, kg, kb, km, kv = jax.random.split(key, 6)

    N, C1, C2, H, W, K = 2, 4, 8, 16, 16, 3

    x = jax.random.normal(kx, (N, C1, H, W), dtype=jnp.float32)
    weight = jax.random.normal(kw, (C2, C1, K, K), dtype=jnp.float32) * 0.1
    gamma = 1.0 + 0.1 * jax.random.normal(kg, (C2,), dtype=jnp.float32)
    beta = 0.1 * jax.random.normal(kb, (C2,), dtype=jnp.float32)
    run_mean = 0.1 * jax.random.normal(km, (C2,), dtype=jnp.float32)
    run_var = jnp.abs(1.0 + 0.1 * jax.random.normal(kv, (C2,), dtype=jnp.float32))

    out = conv_bn_hswish(x, weight, gamma, beta, run_mean, run_var, k=K, s=1)
    out = jax.block_until_ready(out)

    ref = _reference(x, weight, gamma, beta, run_mean, run_var, k=K, s=1)
    assert out.shape == (N, C2, H, W)
    assert out.dtype == jnp.float32
    # bf16 MXU inputs + bf16 output (f32 accumulate/epilogue) -> looser tolerance
    # than a pure-f32 conv; acceptable for inference.
    assert jnp.allclose(out, ref, atol=3e-2, rtol=3e-2), "mismatch vs reference"

    print("KERNEL_OK")
</pallas_src>

<mosaic_0001>
module attributes {stable_mosaic.version = 11 : i64} {
  func.func @_matmul_shift_hswish_kernel(%arg0: i32, %arg1: i32, %arg2: memref<1x256x36xbf16, #tpu.memory_space<vmem>>, %arg3: memref<36x128xbf16, #tpu.memory_space<vmem>>, %arg4: memref<1x128xf32, #tpu.memory_space<vmem>>, %arg5: memref<1x256x128xbf16, #tpu.memory_space<vmem>>) attributes {dimension_semantics = [#tpu.dimension_semantics<parallel>, #tpu.dimension_semantics<parallel>], iteration_bounds = array<i64: 2, 1>, scalar_prefetch = 0 : i64, scratch_operands = 0 : i64, tpu.core_type = #tpu.core_type<tc>, window_params = [{transform_indices = @transform_0, window_bounds = array<i64: 1, 256, 36>}, {pipeline_mode = #tpu.pipeline_mode<synchronous>, transform_indices = @transform_1, window_bounds = array<i64: 36, 128>}, {pipeline_mode = #tpu.pipeline_mode<synchronous>, transform_indices = @transform_2, window_bounds = array<i64: 1, 128>}, {transform_indices = @transform_3, window_bounds = array<i64: 1, 256, 128>}]} {
    %c0 = arith.constant 0 : index
    %c0_0 = arith.constant 0 : index
    %c0_1 = arith.constant 0 : index
    %0 = vector.load %arg2[%c0, %c0_0, %c0_1] : memref<1x256x36xbf16, #tpu.memory_space<vmem>>, vector<1x256x36xbf16>
    %1 = vector.shape_cast %0 : vector<1x256x36xbf16> to vector<256x36xbf16>
    %c0_2 = arith.constant 0 : index
    %c0_3 = arith.constant 0 : index
    %2 = vector.load %arg3[%c0_2, %c0_3] : memref<36x128xbf16, #tpu.memory_space<vmem>>, vector<36x128xbf16>
    %cst = arith.constant dense<0.000000e+00> : vector<256x128xf32>
    %3 = tpu.matmul %1, %2, %cst {dimension_numbers = #tpu.dot_dimension_numbers<[1], [0], [0], [1], [0, 0, 1, 1], [], []>} : vector<256x36xbf16>, vector<36x128xbf16>, vector<256x128xf32> -> vector<256x128xf32>
    %c0_4 = arith.constant 0 : index
    %c0_5 = arith.constant 0 : index
    %4 = vector.load %arg4[%c0_4, %c0_5] : memref<1x128xf32, #tpu.memory_space<vmem>>, vector<1x128xf32>
    %5 = vector.broadcast %4 : vector<1x128xf32> to vector<256x128xf32>
    %6 = arith.addf %3, %5 : vector<256x128xf32>
    %cst_6 = arith.constant 3.000000e+00 : f32
    %7 = vector.broadcast %cst_6 : f32 to vector<256x128xf32>
    %8 = arith.addf %6, %7 : vector<256x128xf32>
    %cst_7 = arith.constant 0.000000e+00 : f32
    %cst_8 = arith.constant 6.000000e+00 : f32
    %9 = vector.broadcast %cst_7 : f32 to vector<256x128xf32>
    %10 = arith.maximumf %9, %8 : vector<256x128xf32>
    %11 = vector.broadcast %cst_8 : f32 to vector<256x128xf32>
    %12 = arith.minimumf %11, %10 : vector<256x128xf32>
    %13 = arith.mulf %6, %12 : vector<256x128xf32>
    %cst_9 = arith.constant 0.166666672 : f32
    %14 = vector.broadcast %cst_9 : f32 to vector<256x128xf32>
    %15 = arith.mulf %13, %14 : vector<256x128xf32>
    %16 = arith.truncf %15 : vector<256x128xf32> to vector<256x128xbf16>
    %c0_10 = arith.constant 0 : index
    %c0_11 = arith.constant 0 : index
    %c0_12 = arith.constant 0 : index
    %17 = vector.load %arg5[%c0_10, %c0_11, %c0_12] : memref<1x256x128xbf16, #tpu.memory_space<vmem>>, vector<1x256x128xbf16>
    %18 = vector.shape_cast %17 : vector<1x256x128xbf16> to vector<256x128xbf16>
    %19 = vector.shape_cast %16 : vector<256x128xbf16> to vector<1x256x128xbf16>
    tpu.vector_store %arg5[%c0_10, %c0_11, %c0_12], %19 {strides = array<i32>} : memref<1x256x128xbf16, #tpu.memory_space<vmem>>, vector<1x256x128xbf16>,
    return
  }
  func.func @transform_0(%arg0: i32, %arg1: i32) -> (i32, i32, i32) {
    %c0_i32 = arith.constant 0 : i32
    %c0_i32_0 = arith.constant 0 : i32
    return %arg0, %arg1, %c0_i32 : i32, i32, i32
  }
  func.func @transform_1(%arg0: i32, %arg1: i32) -> (i32, i32) {
    %c0_i32 = arith.constant 0 : i32
    %c0_i32_0 = arith.constant 0 : i32
    %c0_i32_1 = arith.constant 0 : i32
    return %c0_i32, %c0_i32_0 : i32, i32
  }
  func.func @transform_2(%arg0: i32, %arg1: i32) -> (i32, i32) {
    %c0_i32 = arith.constant 0 : i32
    %c0_i32_0 = arith.constant 0 : i32
    %c0_i32_1 = arith.constant 0 : i32
    return %c0_i32, %c0_i32_0 : i32, i32
  }
  func.func @transform_3(%arg0: i32, %arg1: i32) -> (i32, i32, i32) {
    %c0_i32 = arith.constant 0 : i32
    %c0_i32_0 = arith.constant 0 : i32
    return %arg0, %arg1, %c0_i32 : i32, i32, i32
  }
}

module attributes {stable_mosaic.version = 11 : i64} {
  func.func @_matmul_shift_hswish_kernel(%arg0: i32, %arg1: i32, %arg2: memref<1x256x36xbf16, #tpu.memory_space<vmem>>, %arg3: memref<36x128xbf16, #tpu.memory_space<vmem>>, %arg4: memref<1x128xf32, #tpu.memory_space<vmem>>, %arg5: memref<1x256x128xbf16, #tpu.memory_space<vmem>>) attributes {dimension_semantics = [#tpu.dimension_semantics<parallel>, #tpu.dimension_semantics<parallel>], iteration_bounds = array<i64: 2, 1>, scalar_prefetch = 0 : i64, scratch_operands = 0 : i64, tpu.core_type = #tpu.core_type<tc>, window_params = [{transform_indices = @transform_0, window_bounds = array<i64: 1, 256, 36>}, {pipeline_mode = #tpu.pipeline_mode<synchronous>, transform_indices = @transform_1, window_bounds = array<i64: 36, 128>}, {pipeline_mode = #tpu.pipeline_mode<synchronous>, transform_indices = @transform_2, window_bounds = array<i64: 1, 128>}, {transform_indices = @transform_3, window_bounds = array<i64: 1, 256, 128>}]} {
    %c0 = arith.constant 0 : index
    %c0_0 = arith.constant 0 : index
    %c0_1 = arith.constant 0 : index
    %0 = vector.load %arg2[%c0, %c0_0, %c0_1] : memref<1x256x36xbf16, #tpu.memory_space<vmem>>, vector<1x256x36xbf16>
    %1 = vector.shape_cast %0 : vector<1x256x36xbf16> to vector<256x36xbf16>
    %c0_2 = arith.constant 0 : index
    %c0_3 = arith.constant 0 : index
    %2 = vector.load %arg3[%c0_2, %c0_3] : memref<36x128xbf16, #tpu.memory_space<vmem>>, vector<36x128xbf16>
    %cst = arith.constant dense<0.000000e+00> : vector<256x128xf32>
    %3 = tpu.matmul %1, %2, %cst {dimension_numbers = #tpu.dot_dimension_numbers<[1], [0], [0], [1], [0, 0, 1, 1], [], []>} : vector<256x36xbf16>, vector<36x128xbf16>, vector<256x128xf32> -> vector<256x128xf32>
    %c0_4 = arith.constant 0 : index
    %c0_5 = arith.constant 0 : index
    %4 = vector.load %arg4[%c0_4, %c0_5] : memref<1x128xf32, #tpu.memory_space<vmem>>, vector<1x128xf32>
    %5 = vector.broadcast %4 : vector<1x128xf32> to vector<256x128xf32>
    %6 = arith.addf %3, %5 : vector<256x128xf32>
    %cst_6 = arith.constant 3.000000e+00 : f32
    %7 = vector.broadcast %cst_6 : f32 to vector<256x128xf32>
    %8 = arith.addf %6, %7 : vector<256x128xf32>
    %cst_7 = arith.constant 0.000000e+00 : f32
    %cst_8 = arith.constant 6.000000e+00 : f32
    %9 = vector.broadcast %cst_7 : f32 to vector<256x128xf32>
    %10 = arith.maximumf %9, %8 : vector<256x128xf32>
    %11 = vector.broadcast %cst_8 : f32 to vector<256x128xf32>
    %12 = arith.minimumf %11, %10 : vector<256x128xf32>
    %13 = arith.mulf %6, %12 : vector<256x128xf32>
    %cst_9 = arith.constant 0.166666672 : f32
    %14 = vector.broadcast %cst_9 : f32 to vector<256x128xf32>
    %15 = arith.mulf %13, %14 : vector<256x128xf32>
    %16 = arith.truncf %15 : vector<256x128xf32> to vector<256x128xbf16>
    %c0_10 = arith.constant 0 : index
    %c0_11 = arith.constant 0 : index
    %c0_12 = arith.constant 0 : index
    %17 = vector.load %arg5[%c0_10, %c0_11, %c0_12] : memref<1x256x128xbf16, #tpu.memory_space<vmem>>, vector<1x256x128xbf16>
    %18 = vector.shape_cast %17 : vector<1x256x128xbf16> to vector<256x128xbf16>
    %19 = vector.shape_cast %16 : vector<256x128xbf16> to vector<1x256x128xbf16>
    tpu.vector_store %arg5[%c0_10, %c0_11, %c0_12], %19 {strides = array<i32>} : memref<1x256x128xbf16, #tpu.memory_space<vmem>>, vector<1x256x128xbf16>,
    return
  }
  func.func @transform_0(%arg0: i32, %arg1: i32) -> (i32, i32, i32) {
    %c0_i32 = arith.constant 0 : i32
    %c0_i32_0 = arith.constant 0 : i32
    return %arg0, %arg1, %c0_i32 : i32, i32, i32
  }
  func.func @transform_1(%arg0: i32, %arg1: i32) -> (i32, i32) {
    %c0_i32 = arith.constant 0 : i32
    %c0_i32_0 = arith.constant 0 : i32
    %c0_i32_1 = arith.constant 0 : i32
    return %c0_i32, %c0_i32_0 : i32, i32
  }
  func.func @transform_2(%arg0: i32, %arg1: i32) -> (i32, i32) {
    %c0_i32 = arith.constant 0 : i32
    %c0_i32_0 = arith.constant 0 : i32
    %c0_i32_1 = arith.constant 0 : i32
    return %c0_i32, %c0_i32_0 : i32, i32
  }
  func.func @transform_3(%arg0: i32, %arg1: i32) -> (i32, i32, i32) {
    %c0_i32 = arith.constant 0 : i32
    %c0_i32_0 = arith.constant 0 : i32
    return %arg0, %arg1, %c0_i32 : i32, i32, i32
  }
}

</mosaic_0001>

<bundles_post_ra>
// kernel: tpu_custom_call.1
= control target key start
LH: loop header
LB: loop body
LE: loop exit
PB: predicated region body
PF: predicated region fallthrough
CT: control target
= control target key end

     0   :  { %8 = vsyncpa [#allocation3], 0  ;;  %s1385_s0 = inlined_call_operand.vmem [shape: bf16[2,256,36], index: 0, kind: input, shape index: {}]   ;;  %s1386_s1 = inlined_call_operand.vmem [shape: bf16[36,128], index: 1, kind: input, shape index: {}]   ;;  %s1387_s2 = inlined_call_operand.vmem [shape: f32[1,128], index: 2, kind: input, shape index: {}]   ;;  %s1388_s3 = inlined_call_operand.hbm [shape: bf16[2,256,128], index: 3, kind: output, shape index: {}]  }
   0x1   :  { %10 = vsyncpa [#allocation3 + $0x1], 0  ;;  %s1185_s12 = smov 0   ;;  %s1187_s13 = smov 0  }
   0x2   :  { %s1189_s14 = smov 0   ;;  %s1191_s15 = smov 0  }
   0x3   :  { %s1193_s16 = smov 0   ;;  %s1195_s17 = smov 0  }
   0x4 LB: > { %s800_s18 = sadd.s32 4294967295, %s1161_s17   ;;  %s801_s19 = sadd.s32 4294967294, %s1161_s17   ;;  %s1161_s17 = sphi %s1195_s17, %s16_s17   ;;  %s1157_s16 = sphi %s1193_s16, %s1395_s16   ;;  %s1153_s15 = sphi %s1191_s15, %s1394_s15   ;;  %s1149_s14 = sphi %s1189_s14, %s1393_s14   ;;  %s1145_s13 = sphi %s1187_s13, %s1392_s13   ;;  %s1141_s12 = sphi %s1185_s12, %s1391_s12  }
   0x5   : > { %s28_s20 = sadd.s32 1, %s1157_s16  ;;  %s107_s21 = sadd.s32 1, %s1149_s14 }
   0x6   : > { %p30_p0 = scmp.ge.s32.totalorder %s28_s20, 2  ;;  %p117_p1 = scmp.ne.s32.totalorder %s1149_s14, %s1145_s13 }
   0x7   : > { %p118_p2 = scmp.eq.s32.totalorder %s800_s18, 1  ;;  %p123_p3 = scmp.ne.s32.totalorder %s1145_s13, %s1141_s12 }
   0x8   : > { %s1397_s20 = smov (%p30_p0, %s28_s20), 0  ;;  %p124_p5 = scmp.eq.s32.totalorder %s801_s19, 1 }
   0x9   : > { %p1225_p4 = por %p118_p2, %p117_p1  ;;  %s102_s23 = ssub.s32 %s1157_s16, %s1397_s20 }
   0xa   : > { %p804_p6 = scmp.ge.s32.totalorder %s1161_s17, 1  ;;  %p105_p7 = scmp.eq.s32.totalorder %s102_s23, 0 }
   0xb   : > { %p1232_p8 = por %p124_p5, %p123_p3  ;;  %p161_p9 = scmp.lt.s32.totalorder %s1161_s17, 3 }
   0xc   : > { %s1238_s25 = scalar_select %p105_p7, %s1149_s14, %s107_s21  }
   0xd   : > { %p162_p10 = pnand %p804_p6, %p161_p9 }
   0xe   : > { %p190_p11 = scmp.lt.s32.totalorder (!%p162_p10), %s1153_s15, 1  ;;  %s186_s18 = sand.u32 (!%p162_p10), 1, %s1145_s13  }
   0xf   : > { %165 = sbr.rel (%p162_p10) target bundleno = 245 (0xf5), region = 32  ;;  %s805_s19 = sshll.u32 (!%p162_p10), %s186_s18, 7 }
  0x10   : > { %s1306_s21 = scalar_lea.vmem (!%p162_p10), [#allocation2], %s805_s19  ;;  %s920_s23 = sshll.u32 (!%p162_p10), %s1153_s15, 7 }
  0x11   : > { %s704_s30 = scalar_lea.sflag (!%p162_p10), [#allocation3], %s186_s18  ;;  %s1103_s8 = scalar_lea.hbm (!%p162_p10), %s1388_s3, 256 }
  0x14   : > { %v237_v0 = vld [vmem:[%s1386_s1 + $0x10] sm:$0x3]  ;;  %vm386_vm0 = vcmask 1041408   ;;  %s191_s28 = scalar_select %p190_p11, %s1153_s15, 1  ;;  %v919_v4 = vld [vmem:[%s1386_s1 + $0x8] sm:$0xff]  ;;  %v918_v5 = vld [vmem:[%s1386_s1] sm:$0xff] }
  0x15   : > { %v331_v1 = vunpack.c.l.b16 %v237_v0  ;;  %vm337_vm1 = vcmask 293888   ;;  %v1291_v22 = vld [vmem:[%s1387_s2] ss:$0 sm:$0xff]  ;;  %s718_s15 = sshll.u32 %s1306_s21, 4  ;;  %s719_s15 = int_to_ptr.vmem [resolvable:$true] %s718_s15 }
  0x16   : > { %s901_s4 = sshll.u32 %s191_s28, 7  ;;  %s717_s28 = scalar_lea.hbm %s1388_s3, %s920_s23 }
  0x17   : > { %v334_v2 = vpack.c.b16 %v331_v1, %v331_v1  ;;  %s1254_s9 = scalar_lea.vmem %s1385_s0, %s901_s4  ;;  %s720_s29 = sshll.u32 %s717_s28, 4  ;;  %s721_s29 = int_to_ptr.hbm [resolvable:$true] %s720_s29 }
  0x18   : > { %v902_v6 = vld [vmem:[%s1254_s9] sm:$0xff]  ;;  %v903_v10 = vld [vmem:[%s1254_s9 + $0x8] sm:$0xff]  ;;  %v904_v14 = vld [vmem:[%s1254_s9 + $0x10] sm:$0xff]  ;;  %s1097_s4 = sshra.s32 %s721_s29, 4  ;;  %s1098_s4 = int_to_ptr.hbm [resolvable:$true] %s1097_s4 }
  0x19   : > { %v388_v3 = vsel %vm386_vm0, %v334_v2, 0  ;;  %v906_v7 = vld [vmem:[%s1254_s9 + $0x20] sm:$0xff]  ;;  %v907_v11 = vld [vmem:[%s1254_s9 + $0x28] sm:$0xff]  ;;  %v908_v15 = vld [vmem:[%s1254_s9 + $0x30] sm:$0xff]  ;;  %s1099_s5 = scalar_lea.hbm %s1098_s4, 128  ;;  %p1104_p1 = scmp.lt.s32.totalorder %s1098_s4, %s1388_s3 }
  0x1a   : > { %395 = vmatpush.bf16.msra.mxu0 %v388_v3  ;;  %1016 = vmatpush.bf16.msra.mxu1 %v388_v3  ;;  %v910_v8 = vld [vmem:[%s1254_s9 + $0x40] sm:$0xff]  ;;  %v911_v12 = vld [vmem:[%s1254_s9 + $0x48] sm:$0xff]  ;;  %v912_v16 = vld [vmem:[%s1254_s9 + $0x50] sm:$0xff]  ;;  %p1100_p12 = scmp.ne.s32.totalorder %s1098_s4, %s1099_s5  ;;  %p1105_p2 = scmp.lt.s32.totalorder %s1103_s8, %s1099_s5 }
  0x1b   : > { %1017 = vmatpush.bf16.msra.mxu2 %v388_v3  ;;  %1018 = vmatpush.bf16.msra.mxu3 %v388_v3  ;;  %v914_v9 = vld [vmem:[%s1254_s9 + $0x60] sm:$0xff]  ;;  %v915_v13 = vld [vmem:[%s1254_s9 + $0x68] sm:$0xff]  ;;  %v916_v17 = vld [vmem:[%s1254_s9 + $0x70] sm:$0xff] }
  0x1c   : > { %v905_v18 = vld [vmem:[%s1254_s9 + $0x18] sm:$0xff]  ;;  %p1101_p13 = pnand %p1100_p12, %p1225_p4  ;;  %p1106_p3 = por %p1105_p2, %p1104_p1 }
  0x1d   : > { %v909_v19 = vld [vmem:[%s1254_s9 + $0x38] sm:$0xff] }
  0x1e   : > { %396 = vmatpush.bf16.msra.mxu0 %v919_v4  ;;  %1019 = vmatpush.bf16.msra.mxu1 %v919_v4  ;;  %v913_v20 = vld [vmem:[%s1254_s9 + $0x58] sm:$0xff]  ;;  %p1102_p0 = pneg %p1101_p13 }
  0x1f   : > { %1020 = vmatpush.bf16.msra.mxu2 %v919_v4  ;;  %1021 = vmatpush.bf16.msra.mxu3 %v919_v4  ;;  %v917_v21 = vld [vmem:[%s1254_s9 + $0x78] sm:$0xff] }
  0x20   : > { %p1107_p5 = pnand %p1106_p3, %p1102_p0 }
  0x22   : > { %397 = vmatpush.bf16.msra.mxu0 %v918_v5  ;;  %1022 = vmatpush.bf16.msra.mxu1 %v918_v5 }
  0x23   : > { %1023 = vmatpush.bf16.msra.mxu2 %v918_v5  ;;  %1024 = vmatpush.bf16.msra.mxu3 %v918_v5 }
  0x25   : > { %880 = vmatmul.msk.bf16.vlgmr.msra.gmra.mxu0 %vm337_vm1, %v902_v6  ;;  %884 = vmatmul.msk.bf16.vlgmr.msra.gmra.mxu1 %vm337_vm1, %v906_v7 }
  0x26   : > { %888 = vmatmul.msk.bf16.vlgmr.msra.gmra.mxu2 %vm337_vm1, %v910_v8  ;;  %892 = vmatmul.msk.bf16.vlgmr.msra.gmra.mxu3 %vm337_vm1, %v914_v9 }
  0x35   : > { %881 = vmatmul.msk.bf16.gmra.mxu0 %vm337_vm1, %v903_v10  ;;  %885 = vmatmul.msk.bf16.gmra.mxu1 %vm337_vm1, %v907_v11 }
  0x36   : > { %889 = vmatmul.msk.bf16.gmra.mxu2 %vm337_vm1, %v911_v12  ;;  %893 = vmatmul.msk.bf16.gmra.mxu3 %vm337_vm1, %v915_v13 }
  0x45   : > { %882 = vmatmul.msk.bf16.gmra.mxu0 %vm337_vm1, %v904_v14  ;;  %886 = vmatmul.msk.bf16.gmra.mxu1 %vm337_vm1, %v908_v15 }
  0x46   : > { %890 = vmatmul.msk.bf16.gmra.mxu2 %vm337_vm1, %v912_v16  ;;  %894 = vmatmul.msk.bf16.gmra.mxu3 %vm337_vm1, %v916_v17 }
  0x55   : > { %883 = vmatmul.msk.bf16.gmra.mxu0 %vm337_vm1, %v905_v18  ;;  %887 = vmatmul.msk.bf16.gmra.mxu1 %vm337_vm1, %v909_v19 }
  0x56   : > { %891 = vmatmul.msk.bf16.gmra.mxu2 %vm337_vm1, %v913_v20  ;;  %895 = vmatmul.msk.bf16.gmra.mxu3 %vm337_vm1, %v917_v21 }
  0xa2   : > { %v399_v23 = vpop.f32.mrf.mxu0  ;;  %v419_v24 = vpop.f32.mrf.mxu1 }
  0xa3   : > { %v400_v25 = vadd.f32 %v1291_v22, %v399_v23  ;;  %v420_v26 = vadd.f32 %v1291_v22, %v419_v24 }
  0xa5   : > { %v479_v27 = vadd.f32 3.0, %v400_v25  ;;  %v487_v28 = vadd.f32 3.0, %v420_v26 }
  0xa7   : > { %v511_v29 = vmax.f32 %v479_v27, 0.0  ;;  %v519_v30 = vmax.f32 %v487_v28, 0.0 }
  0xa9   : > { %v439_v31 = vpop.f32.mrf.mxu2  ;;  %v459_v32 = vpop.f32.mrf.mxu3  ;;  %v543_v33 = vmin.f32 %v511_v29, 6.0  ;;  %v551_v40 = vmin.f32 %v519_v30, 6.0 }
  0xaa   : > { %v440_v34 = vadd.f32 %v1291_v22, %v439_v31  ;;  %v460_v35 = vadd.f32 %v1291_v22, %v459_v32  ;;  %v401_v36 = vpop.f32.mrf.mxu0  ;;  %v421_v37 = vpop.f32.mrf.mxu1 }
  0xab   : > { %v402_v38 = vadd.f32 %v1291_v22, %v401_v36  ;;  %v422_v39 = vadd.f32 %v1291_v22, %v421_v37  ;;  %v575_v45 = vmul.f32 %v543_v33, %v400_v25  ;;  %v583_v50 = vmul.f32 %v551_v40, %v420_v26 }
  0xac   : > { %v495_v41 = vadd.f32 3.0, %v440_v34  ;;  %v503_v42 = vadd.f32 3.0, %v460_v35 }
  0xad   : > { %v480_v43 = vadd.f32 3.0, %v402_v38  ;;  %v488_v44 = vadd.f32 3.0, %v422_v39  ;;  %v607_v56 = vmul.f32 0.16666667, %v575_v45  ;;  %v615_v2 = vmul.f32 0.16666667, %v583_v50 }
  0xae   : > { %v527_v46 = vmax.f32 %v495_v41, 0.0  ;;  %v535_v47 = vmax.f32 %v503_v42, 0.0 }
  0xaf   : > { %v512_v48 = vmax.f32 %v480_v43, 0.0  ;;  %v520_v49 = vmax.f32 %v488_v44, 0.0 }
  0xb0   : > { %v559_v51 = vmin.f32 %v527_v46, 6.0  ;;  %v567_v57 = vmin.f32 %v535_v47, 6.0 }
  0xb1   : > { %v544_v52 = vmin.f32 %v512_v48, 6.0  ;;  %v552_v53 = vmin.f32 %v520_v49, 6.0  ;;  %v441_v54 = vpop.f32.mrf.mxu2  ;;  %v461_v55 = vpop.f32.mrf.mxu3 }
  0xb2   : > { %v442_v58 = vadd.f32 %v1291_v22, %v441_v54  ;;  %v462_v59 = vadd.f32 %v1291_v22, %v461_v55  ;;  %v404_v60 = vpop.f32.mrf.mxu0  ;;  %v424_v61 = vpop.f32.mrf.mxu1  ;;  %v591_v3 = vmul.f32 %v559_v51, %v440_v34  ;;  %v599_v10 = vmul.f32 %v567_v57, %v460_v35 }
  0xb3   : > { %v576_v62 = vmul.f32 %v544_v52, %v402_v38  ;;  %v584_v63 = vmul.f32 %v552_v53, %v422_v39  ;;  %v405_v0 = vadd.f32 %v1291_v22, %v404_v60  ;;  %v425_v1 = vadd.f32 %v1291_v22, %v424_v61 }
  0xb4   : > { %v496_v4 = vadd.f32 3.0, %v442_v58  ;;  %v504_v5 = vadd.f32 3.0, %v462_v59  ;;  %v623_v19 = vmul.f32 0.16666667, %v591_v3  ;;  %v631_v30 = vmul.f32 0.16666667, %v599_v10 }
  0xb5   : > { %v608_v6 = vmul.f32 0.16666667, %v576_v62  ;;  %v616_v7 = vmul.f32 0.16666667, %v584_v63  ;;  %v481_v8 = vadd.f32 3.0, %v405_v0  ;;  %v489_v9 = vadd.f32 3.0, %v425_v1 }
  0xb6   : > { %v528_v11 = vmax.f32 %v496_v4, 0.0  ;;  %v536_v12 = vmax.f32 %v504_v5, 0.0 }
  0xb7   : > { %v924_v13 = vpack.c.bf16 %v608_v6, %v607_v56  ;;  %v944_v14 = vpack.c.bf16 %v616_v7, %v615_v2  ;;  %v513_v15 = vmax.f32 %v481_v8, 0.0  ;;  %v521_v16 = vmax.f32 %v489_v9, 0.0 }
  0xb8   : > { %v560_v17 = vmin.f32 %v528_v11, 6.0  ;;  %v568_v18 = vmin.f32 %v536_v12, 6.0 }
  0xb9   : > { %925 = vst [vmem:[%s1306_s21] sm:$0xff] %v924_v13   ;;  %v545_v20 = vmin.f32 %v513_v15, 6.0  ;;  %v444_v21 = vpop.f32.mrf.mxu2  ;;  %v464_v23 = vpop.f32.mrf.mxu3  ;;  %v553_v31 = vmin.f32 %v521_v16, 6.0 }
  0xba   : > { %1004 = vst [vmem:[%s1306_s21 + $0x20] sm:$0xff] %v944_v14   ;;  %v592_v24 = vmul.f32 %v560_v17, %v442_v58  ;;  %v600_v25 = vmul.f32 %v568_v18, %v462_v59  ;;  %v445_v26 = vadd.f32 %v1291_v22, %v444_v21  ;;  %v465_v27 = vadd.f32 %v1291_v22, %v464_v23  ;;  %v406_v28 = vpop.f32.mrf.mxu0  ;;  %v426_v29 = vpop.f32.mrf.mxu1 }
  0xbb   : > { %v407_v32 = vadd.f32 %v1291_v22, %v406_v28  ;;  %v427_v33 = vadd.f32 %v1291_v22, %v426_v29  ;;  %v577_v38 = vmul.f32 %v545_v20, %v405_v0  ;;  %v585_v47 = vmul.f32 %v553_v31, %v425_v1 }
  0xbc   : > { %v624_v34 = vmul.f32 0.16666667, %v592_v24  ;;  %v632_v35 = vmul.f32 0.16666667, %v600_v25  ;;  %v497_v36 = vadd.f32 3.0, %v445_v26  ;;  %v505_v37 = vadd.f32 3.0, %v465_v27 }
  0xbd   : > { %v482_v39 = vadd.f32 3.0, %v407_v32  ;;  %v490_v40 = vadd.f32 3.0, %v427_v33  ;;  %v609_v53 = vmul.f32 0.16666667, %v577_v38  ;;  %v617_v63 = vmul.f32 0.16666667, %v585_v47 }
  0xbe   : > { %v964_v41 = vpack.c.bf16 %v624_v34, %v623_v19  ;;  %v984_v42 = vpack.c.bf16 %v632_v35, %v631_v30  ;;  %v529_v43 = vmax.f32 %v497_v36, 0.0  ;;  %v537_v44 = vmax.f32 %v505_v37, 0.0 }
  0xbf   : > { %v514_v45 = vmax.f32 %v482_v39, 0.0  ;;  %v522_v46 = vmax.f32 %v490_v40, 0.0 }
  0xc0   : > { %1008 = vst [vmem:[%s1306_s21 + $0x40] sm:$0xff] %v964_v41   ;;  %v561_v48 = vmin.f32 %v529_v43, 6.0  ;;  %v569_v54 = vmin.f32 %v537_v44, 6.0 }
  0xc1   : > { %1012 = vst [vmem:[%s1306_s21 + $0x60] sm:$0xff] %v984_v42   ;;  %v546_v49 = vmin.f32 %v514_v45, 6.0  ;;  %v554_v50 = vmin.f32 %v522_v46, 6.0  ;;  %v446_v51 = vpop.f32.mrf.mxu2  ;;  %v466_v52 = vpop.f32.mrf.mxu3 }
  0xc2   : > { %v447_v55 = vadd.f32 %v1291_v22, %v446_v51  ;;  %v467_v56 = vadd.f32 %v1291_v22, %v466_v52  ;;  %v409_v57 = vpop.f32.mrf.mxu0  ;;  %v429_v58 = vpop.f32.mrf.mxu1  ;;  %v593_v0 = vmul.f32 %v561_v48, %v445_v26  ;;  %v601_v7 = vmul.f32 %v569_v54, %v465_v27 }
  0xc3   : > { %v578_v59 = vmul.f32 %v546_v49, %v407_v32  ;;  %v586_v60 = vmul.f32 %v554_v50, %v427_v33  ;;  %v410_v61 = vadd.f32 %v1291_v22, %v409_v57  ;;  %v430_v62 = vadd.f32 %v1291_v22, %v429_v58 }
  0xc4   : > { %v498_v1 = vadd.f32 3.0, %v447_v55  ;;  %v506_v2 = vadd.f32 3.0, %v467_v56  ;;  %v625_v16 = vmul.f32 0.16666667, %v593_v0  ;;  %v633_v27 = vmul.f32 0.16666667, %v601_v7 }
  0xc5   : > { %v610_v3 = vmul.f32 0.16666667, %v578_v59  ;;  %v618_v4 = vmul.f32 0.16666667, %v586_v60  ;;  %v483_v5 = vadd.f32 3.0, %v410_v61  ;;  %v491_v6 = vadd.f32 3.0, %v430_v62 }
  0xc6   : > { %v530_v8 = vmax.f32 %v498_v1, 0.0  ;;  %v538_v9 = vmax.f32 %v506_v2, 0.0 }
  0xc7   : > { %v929_v10 = vpack.c.bf16 %v610_v3, %v609_v53  ;;  %v949_v11 = vpack.c.bf16 %v618_v4, %v617_v63  ;;  %v515_v12 = vmax.f32 %v483_v5, 0.0  ;;  %v523_v13 = vmax.f32 %v491_v6, 0.0 }
  0xc8   : > { %v562_v14 = vmin.f32 %v530_v8, 6.0  ;;  %v570_v15 = vmin.f32 %v538_v9, 6.0 }
  0xc9   : > { %1001 = vst [vmem:[%s1306_s21 + $0x8] sm:$0xff] %v929_v10   ;;  %v547_v17 = vmin.f32 %v515_v12, 6.0  ;;  %v449_v18 = vpop.f32.mrf.mxu2  ;;  %v469_v19 = vpop.f32.mrf.mxu3  ;;  %v555_v28 = vmin.f32 %v523_v13, 6.0 }
  0xca   : > { %1005 = vst [vmem:[%s1306_s21 + $0x28] sm:$0xff] %v949_v11   ;;  %v594_v20 = vmul.f32 %v562_v14, %v447_v55  ;;  %v602_v21 = vmul.f32 %v570_v15, %v467_v56  ;;  %v450_v23 = vadd.f32 %v1291_v22, %v449_v18  ;;  %v470_v24 = vadd.f32 %v1291_v22, %v469_v19  ;;  %v411_v25 = vpop.f32.mrf.mxu0  ;;  %v431_v26 = vpop.f32.mrf.mxu1 }
  0xcb   : > { %v412_v29 = vadd.f32 %v1291_v22, %v411_v25  ;;  %v432_v30 = vadd.f32 %v1291_v22, %v431_v26  ;;  %v579_v35 = vmul.f32 %v547_v17, %v410_v61  ;;  %v587_v44 = vmul.f32 %v555_v28, %v430_v62 }
  0xcc   : > { %v626_v31 = vmul.f32 0.16666667, %v594_v20  ;;  %v634_v32 = vmul.f32 0.16666667, %v602_v21  ;;  %v499_v33 = vadd.f32 3.0, %v450_v23  ;;  %v507_v34 = vadd.f32 3.0, %v470_v24 }
  0xcd   : > { %v484_v36 = vadd.f32 3.0, %v412_v29  ;;  %v492_v37 = vadd.f32 3.0, %v432_v30  ;;  %v611_v50 = vmul.f32 0.16666667, %v579_v35  ;;  %v619_v60 = vmul.f32 0.16666667, %v587_v44 }
  0xce   : > { %v969_v38 = vpack.c.bf16 %v626_v31, %v625_v16  ;;  %v989_v39 = vpack.c.bf16 %v634_v32, %v633_v27  ;;  %v531_v40 = vmax.f32 %v499_v33, 0.0  ;;  %v539_v41 = vmax.f32 %v507_v34, 0.0 }
  0xcf   : > { %v516_v42 = vmax.f32 %v484_v36, 0.0  ;;  %v524_v43 = vmax.f32 %v492_v37, 0.0 }
  0xd0   : > { %1009 = vst [vmem:[%s1306_s21 + $0x48] sm:$0xff] %v969_v38   ;;  %v563_v45 = vmin.f32 %v531_v40, 6.0  ;;  %v571_v51 = vmin.f32 %v539_v41, 6.0 }
  0xd1   : > { %1013 = vst [vmem:[%s1306_s21 + $0x68] sm:$0xff] %v989_v39   ;;  %v548_v46 = vmin.f32 %v516_v42, 6.0  ;;  %v556_v47 = vmin.f32 %v524_v43, 6.0  ;;  %v451_v48 = vpop.f32.mrf.mxu2  ;;  %v471_v49 = vpop.f32.mrf.mxu3 }
  0xd2   : > { %v452_v52 = vadd.f32 %v1291_v22, %v451_v48  ;;  %v472_v53 = vadd.f32 %v1291_v22, %v471_v49  ;;  %v414_v54 = vpop.f32.mrf.mxu0  ;;  %v434_v55 = vpop.f32.mrf.mxu1  ;;  %v595_v61 = vmul.f32 %v563_v45, %v450_v23  ;;  %v603_v6 = vmul.f32 %v571_v51, %v470_v24 }
  0xd3   : > { %v580_v56 = vmul.f32 %v548_v46, %v412_v29  ;;  %v588_v57 = vmul.f32 %v556_v47, %v432_v30  ;;  %v415_v58 = vadd.f32 %v1291_v22, %v414_v54  ;;  %v435_v59 = vadd.f32 %v1291_v22, %v434_v55 }
  0xd4   : > { %v500_v62 = vadd.f32 3.0, %v452_v52  ;;  %v508_v63 = vadd.f32 3.0, %v472_v53  ;;  %v627_v12 = vmul.f32 0.16666667, %v595_v61  ;;  %v635_v23 = vmul.f32 0.16666667, %v603_v6 }
  0xd5   : > { %v612_v0 = vmul.f32 0.16666667, %v580_v56  ;;  %v620_v1 = vmul.f32 0.16666667, %v588_v57  ;;  %v485_v2 = vadd.f32 3.0, %v415_v58  ;;  %v493_v3 = vadd.f32 3.0, %v435_v59 }
  0xd6   : > { %v532_v4 = vmax.f32 %v500_v62, 0.0  ;;  %v540_v5 = vmax.f32 %v508_v63, 0.0 }
  0xd7   : > { %v934_v7 = vpack.c.bf16 %v612_v0, %v611_v50  ;;  %v954_v8 = vpack.c.bf16 %v620_v1, %v619_v60  ;;  %v517_v9 = vmax.f32 %v485_v2, 0.0  ;;  %v525_v13 = vmax.f32 %v493_v3, 0.0 }
  0xd8   : > { %v564_v10 = vmin.f32 %v532_v4, 6.0  ;;  %v572_v11 = vmin.f32 %v540_v5, 6.0 }
  0xd9   : > { %1002 = vst [vmem:[%s1306_s21 + $0x10] sm:$0xff] %v934_v7   ;;  %v454_v14 = vpop.f32.mrf.mxu2  ;;  %v474_v15 = vpop.f32.mrf.mxu3  ;;  %v549_v24 = vmin.f32 %v517_v9, 6.0  ;;  %v557_v31 = vmin.f32 %v525_v13, 6.0 }
  0xda   : > { %1006 = vst [vmem:[%s1306_s21 + $0x30] sm:$0xff] %v954_v8   ;;  %v596_v16 = vmul.f32 %v564_v10, %v452_v52  ;;  %v604_v17 = vmul.f32 %v572_v11, %v472_v53  ;;  %v455_v18 = vadd.f32 %v1291_v22, %v454_v14  ;;  %v475_v19 = vadd.f32 %v1291_v22, %v474_v15  ;;  %v416_v20 = vpop.f32.mrf.mxu0  ;;  %v436_v21 = vpop.f32.mrf.mxu1 }
  0xdb   : > { %v417_v25 = vadd.f32 %v1291_v22, %v416_v20  ;;  %v437_v26 = vadd.f32 %v1291_v22, %v436_v21  ;;  %v581_v39 = vmul.f32 %v549_v24, %v415_v58  ;;  %v589_v41 = vmul.f32 %v557_v31, %v435_v59 }
  0xdc   : > { %v628_v27 = vmul.f32 0.16666667, %v596_v16  ;;  %v636_v28 = vmul.f32 0.16666667, %v604_v17  ;;  %v501_v29 = vadd.f32 3.0, %v455_v18  ;;  %v509_v30 = vadd.f32 3.0, %v475_v19 }
  0xdd   : > { %v486_v32 = vadd.f32 3.0, %v417_v25  ;;  %v494_v33 = vadd.f32 3.0, %v437_v26  ;;  %v613_v51 = vmul.f32 0.16666667, %v581_v39  ;;  %v621_v55 = vmul.f32 0.16666667, %v589_v41 }
  0xde   : > { %v974_v34 = vpack.c.bf16 %v628_v27, %v627_v12  ;;  %v994_v35 = vpack.c.bf16 %v636_v28, %v635_v23  ;;  %v533_v36 = vmax.f32 %v501_v29, 0.0  ;;  %v541_v40 = vmax.f32 %v509_v30, 0.0 }
  0xdf   : > { %v518_v37 = vmax.f32 %v486_v32, 0.0  ;;  %v526_v38 = vmax.f32 %v494_v33, 0.0 }
  0xe0   : > { %1010 = vst [vmem:[%s1306_s21 + $0x50] sm:$0xff] %v974_v34   ;;  %v565_v48 = vmin.f32 %v533_v36, 6.0  ;;  %v573_v52 = vmin.f32 %v541_v40, 6.0 }
  0xe1   : > { %1014 = vst [vmem:[%s1306_s21 + $0x70] sm:$0xff] %v994_v35   ;;  %v550_v42 = vmin.f32 %v518_v37, 6.0  ;;  %v558_v43 = vmin.f32 %v526_v38, 6.0  ;;  %v456_v44 = vpop.f32.mrf.mxu2  ;;  %v476_v45 = vpop.f32.mrf.mxu3 }
  0xe2   : > { %v457_v46 = vadd.f32 %v1291_v22, %v456_v44  ;;  %v477_v47 = vadd.f32 %v1291_v22, %v476_v45  ;;  %v597_v60 = vmul.f32 %v565_v48, %v455_v18  ;;  %v605_v22 = vmul.f32 %v573_v52, %v475_v19 }
  0xe3   : > { %v582_v49 = vmul.f32 %v550_v42, %v417_v25  ;;  %v590_v50 = vmul.f32 %v558_v43, %v437_v26 }
  0xe4   : > { %v502_v53 = vadd.f32 3.0, %v457_v46  ;;  %v510_v54 = vadd.f32 3.0, %v477_v47  ;;  %v629_v3 = vmul.f32 0.16666667, %v597_v60  ;;  %v637_v4 = vmul.f32 0.16666667, %v605_v22 }
  0xe5   : > { %v614_v56 = vmul.f32 0.16666667, %v582_v49  ;;  %v622_v57 = vmul.f32 0.16666667, %v590_v50 }
  0xe6   : > { %v534_v58 = vmax.f32 %v502_v53, 0.0  ;;  %v542_v59 = vmax.f32 %v510_v54, 0.0 }
  0xe7   : > { %v939_v61 = vpack.c.bf16 %v614_v56, %v613_v51  ;;  %v959_v62 = vpack.c.bf16 %v622_v57, %v621_v55 }
  0xe8   : > { %v566_v63 = vmin.f32 %v534_v58, 6.0  ;;  %v574_v0 = vmin.f32 %v542_v59, 6.0 }
  0xe9   : > { %1003 = vst [vmem:[%s1306_s21 + $0x18] sm:$0xff] %v939_v61  }
  0xea   : > { %1007 = vst [vmem:[%s1306_s21 + $0x38] sm:$0xff] %v959_v62   ;;  %v598_v1 = vmul.f32 %v566_v63, %v457_v46  ;;  %v606_v2 = vmul.f32 %v574_v0, %v477_v47 }
  0xec   : > { %v630_v5 = vmul.f32 0.16666667, %v598_v1  ;;  %v638_v6 = vmul.f32 0.16666667, %v606_v2 }
  0xee   : > { %v979_v7 = vpack.c.bf16 %v630_v5, %v629_v3  ;;  %v999_v8 = vpack.c.bf16 %v638_v6, %v637_v4 }
  0xf0   : > { %1011 = vst [vmem:[%s1306_s21 + $0x58] sm:$0xff] %v979_v7  }
  0xf1   : > { %1015 = vst [vmem:[%s1306_s21 + $0x78] sm:$0xff] %v999_v8  }
  0xf2   : > { %1110 = shalt.err (!%p1107_p5)
}
  0xf3   : > { %s1163_s11 = smov 64   ;;  %s1164_s18 = smov 4  }
  0xf4   : > { %1025 = dma.vmem_to_hbm [thread:$0]  (%p1225_p4), %s719_s15, 2048, %s721_s29, %s704_s30, %s1163_s11, %s1163_s11, %s1164_s18  }
  0xf5 PF: > { %p1031_p6 = scmp.ge.s32.totalorder %s1161_s17, 2  ;;  %s735_s19 = sand.u32 1, %s1141_s12  }
  0xf6   : > { %s736_s21 = scalar_lea.sflag [#allocation3], %s735_s19 }
  0xf7   : > { %p1028_p7 = pnand %p1031_p6, %p1232_p8 }
  0xf9   : > { %p1029_p9 = pneg %p1028_p7 }
  0xfb   : > { %1136 = dma.done.wait (%p1029_p9), %s736_s21, 2048  }
  0xfc   : > { %1138 = vsyncadd (%p1029_p9), %s736_s21, 4294965248  ;;  %s16_s17 = sadd.s32 1, %s1161_s17   ;;  %s1391_s12 = smov %s1145_s13 }
  0xfd   : > { %p13_p10 = scmp.ge.s32.totalorder %s16_s17, 4   ;;  %s1392_s13 = smov %s1149_s14 }
  0xfe   : > { %s1393_s14 = smov %s1238_s25  ;;  %s1394_s15 = smov %s1157_s16 }
  0xff   : > { %s1395_s16 = smov %s1397_s20  ;;  %15 = sbr.rel (!%p13_p10) target bundleno = 4 (0x4), region = 67 }
 0x104   :  { %742 = vsyncpa [#allocation3], 1 }
 0x105   :  { %744 = vsyncpa [#allocation3 + $0x1], 1 }

// kernel: tpu_custom_call.1
= control target key start
LH: loop header
LB: loop body
LE: loop exit
PB: predicated region body
PF: predicated region fallthrough
CT: control target
= control target key end

     0   :  { %8 = vsyncpa [#allocation3], 0  ;;  %s1385_s0 = inlined_call_operand.vmem [shape: bf16[2,256,36], index: 0, kind: input, shape index: {}]   ;;  %s1386_s1 = inlined_call_operand.vmem [shape: bf16[36,128], index: 1, kind: input, shape index: {}]   ;;  %s1387_s2 = inlined_call_operand.vmem [shape: f32[1,128], index: 2, kind: input, shape index: {}]   ;;  %s1388_s3 = inlined_call_operand.hbm [shape: bf16[2,256,128], index: 3, kind: output, shape index: {}]  }
   0x1   :  { %10 = vsyncpa [#allocation3 + $0x1], 0  ;;  %s1185_s12 = smov 0   ;;  %s1187_s13 = smov 0  }
   0x2   :  { %s1189_s14 = smov 0   ;;  %s1191_s15 = smov 0  }
   0x3   :  { %s1193_s16 = smov 0   ;;  %s1195_s17 = smov 0  }
   0x4 LB: > { %s800_s18 = sadd.s32 4294967295, %s1161_s17   ;;  %s801_s19 = sadd.s32 4294967294, %s1161_s17   ;;  %s1161_s17 = sphi %s1195_s17, %s16_s17   ;;  %s1157_s16 = sphi %s1193_s16, %s1395_s16   ;;  %s1153_s15 = sphi %s1191_s15, %s1394_s15   ;;  %s1149_s14 = sphi %s1189_s14, %s1393_s14   ;;  %s1145_s13 = sphi %s1187_s13, %s1392_s13   ;;  %s1141_s12 = sphi %s1185_s12, %s1391_s12  }
   0x5   : > { %s28_s20 = sadd.s32 1, %s1157_s16  ;;  %s107_s21 = sadd.s32 1, %s1149_s14 }
   0x6   : > { %p30_p0 = scmp.ge.s32.totalorder %s28_s20, 2  ;;  %p117_p1 = scmp.ne.s32.totalorder %s1149_s14, %s1145_s13 }
   0x7   : > { %p118_p2 = scmp.eq.s32.totalorder %s800_s18, 1  ;;  %p123_p3 = scmp.ne.s32.totalorder %s1145_s13, %s1141_s12 }
   0x8   : > { %s1397_s20 = smov (%p30_p0, %s28_s20), 0  ;;  %p124_p5 = scmp.eq.s32.totalorder %s801_s19, 1 }
   0x9   : > { %p1225_p4 = por %p118_p2, %p117_p1  ;;  %s102_s23 = ssub.s32 %s1157_s16, %s1397_s20 }
   0xa   : > { %p804_p6 = scmp.ge.s32.totalorder %s1161_s17, 1  ;;  %p105_p7 = scmp.eq.s32.totalorder %s102_s23, 0 }
   0xb   : > { %p1232_p8 = por %p124_p5, %p123_p3  ;;  %p161_p9 = scmp.lt.s32.totalorder %s1161_s17, 3 }
   0xc   : > { %s1238_s25 = scalar_select %p105_p7, %s1149_s14, %s107_s21  }
   0xd   : > { %p162_p10 = pnand %p804_p6, %p161_p9 }
   0xe   : > { %p190_p11 = scmp.lt.s32.totalorder (!%p162_p10), %s1153_s15, 1  ;;  %s186_s18 = sand.u32 (!%p162_p10), 1, %s1145_s13  }
   0xf   : > { %165 = sbr.rel (%p162_p10) target bundleno = 245 (0xf5), region = 32  ;;  %s805_s19 = sshll.u32 (!%p162_p10), %s186_s18, 7 }
  0x10   : > { %s1306_s21 = scalar_lea.vmem (!%p162_p10), [#allocation2], %s805_s19  ;;  %s920_s23 = sshll.u32 (!%p162_p10), %s1153_s15, 7 }
  0x11   : > { %s704_s30 = scalar_lea.sflag (!%p162_p10), [#allocation3], %s186_s18  ;;  %s1103_s8 = scalar_lea.hbm (!%p162_p10), %s1388_s3, 256 }
  0x14   : > { %v237_v0 = vld [vmem:[%s1386_s1 + $0x10] sm:$0x3]  ;;  %vm386_vm0 = vcmask 1041408   ;;  %s191_s28 = scalar_select %p190_p11, %s1153_s15, 1  ;;  %v919_v4 = vld [vmem:[%s1386_s1 + $0x8] sm:$0xff]  ;;  %v918_v5 = vld [vmem:[%s1386_s1] sm:$0xff] }
  0x15   : > { %v331_v1 = vunpack.c.l.b16 %v237_v0  ;;  %vm337_vm1 = vcmask 293888   ;;  %v1291_v22 = vld [vmem:[%s1387_s2] ss:$0 sm:$0xff]  ;;  %s718_s15 = sshll.u32 %s1306_s21, 4  ;;  %s719_s15 = int_to_ptr.vmem [resolvable:$true] %s718_s15 }
  0x16   : > { %s901_s4 = sshll.u32 %s191_s28, 7  ;;  %s717_s28 = scalar_lea.hbm %s1388_s3, %s920_s23 }
  0x17   : > { %v334_v2 = vpack.c.b16 %v331_v1, %v331_v1  ;;  %s1254_s9 = scalar_lea.vmem %s1385_s0, %s901_s4  ;;  %s720_s29 = sshll.u32 %s717_s28, 4  ;;  %s721_s29 = int_to_ptr.hbm [resolvable:$true] %s720_s29 }
  0x18   : > { %v902_v6 = vld [vmem:[%s1254_s9] sm:$0xff]  ;;  %v903_v10 = vld [vmem:[%s1254_s9 + $0x8] sm:$0xff]  ;;  %v904_v14 = vld [vmem:[%s1254_s9 + $0x10] sm:$0xff]  ;;  %s1097_s4 = sshra.s32 %s721_s29, 4  ;;  %s1098_s4 = int_to_ptr.hbm [resolvable:$true] %s1097_s4 }
  0x19   : > { %v388_v3 = vsel %vm386_vm0, %v334_v2, 0  ;;  %v906_v7 = vld [vmem:[%s1254_s9 + $0x20] sm:$0xff]  ;;  %v907_v11 = vld [vmem:[%s1254_s9 + $0x28] sm:$0xff]  ;;  %v908_v15 = vld [vmem:[%s1254_s9 + $0x30] sm:$0xff]  ;;  %s1099_s5 = scalar_lea.hbm %s1098_s4, 128  ;;  %p1104_p1 = scmp.lt.s32.totalorder %s1098_s4, %s1388_s3 }
  0x1a   : > { %395 = vmatpush.bf16.msra.mxu0 %v388_v3  ;;  %1016 = vmatpush.bf16.msra.mxu1 %v388_v3  ;;  %v910_v8 = vld [vmem:[%s1254_s9 + $0x40] sm:$0xff]  ;;  %v911_v12 = vld [vmem:[%s1254_s9 + $0x48] sm:$0xff]  ;;  %v912_v16 = vld [vmem:[%s1254_s9 + $0x50] sm:$0xff]  ;;  %p1100_p12 = scmp.ne.s32.totalorder %s1098_s4, %s1099_s5  ;;  %p1105_p2 = scmp.lt.s32.totalorder %s1103_s8, %s1099_s5 }
  0x1b   : > { %1017 = vmatpush.bf16.msra.mxu2 %v388_v3  ;;  %1018 = vmatpush.bf16.msra.mxu3 %v388_v3  ;;  %v914_v9 = vld [vmem:[%s1254_s9 + $0x60] sm:$0xff]  ;;  %v915_v13 = vld [vmem:[%s1254_s9 + $0x68] sm:$0xff]  ;;  %v916_v17 = vld [vmem:[%s1254_s9 + $0x70] sm:$0xff] }
  0x1c   : > { %v905_v18 = vld [vmem:[%s1254_s9 + $0x18] sm:$0xff]  ;;  %p1101_p13 = pnand %p1100_p12, %p1225_p4  ;;  %p1106_p3 = por %p1105_p2, %p1104_p1 }
  0x1d   : > { %v909_v19 = vld [vmem:[%s1254_s9 + $0x38] sm:$0xff] }
  0x1e   : > { %396 = vmatpush.bf16.msra.mxu0 %v919_v4  ;;  %1019 = vmatpush.bf16.msra.mxu1 %v919_v4  ;;  %v913_v20 = vld [vmem:[%s1254_s9 + $0x58] sm:$0xff]  ;;  %p1102_p0 = pneg %p1101_p13 }
  0x1f   : > { %1020 = vmatpush.bf16.msra.mxu2 %v919_v4  ;;  %1021 = vmatpush.bf16.msra.mxu3 %v919_v4  ;;  %v917_v21 = vld [vmem:[%s1254_s9 + $0x78] sm:$0xff] }
  0x20   : > { %p1107_p5 = pnand %p1106_p3, %p1102_p0 }
  0x22   : > { %397 = vmatpush.bf16.msra.mxu0 %v918_v5  ;;  %1022 = vmatpush.bf16.msra.mxu1 %v918_v5 }
  0x23   : > { %1023 = vmatpush.bf16.msra.mxu2 %v918_v5  ;;  %1024 = vmatpush.bf16.msra.mxu3 %v918_v5 }
  0x25   : > { %880 = vmatmul.msk.bf16.vlgmr.msra.gmra.mxu0 %vm337_vm1, %v902_v6  ;;  %884 = vmatmul.msk.bf16.vlgmr.msra.gmra.mxu1 %vm337_vm1, %v906_v7 }
  0x26   : > { %888 = vmatmul.msk.bf16.vlgmr.msra.gmra.mxu2 %vm337_vm1, %v910_v8  ;;  %892 = vmatmul.msk.bf16.vlgmr.msra.gmra.mxu3 %vm337_vm1, %v914_v9 }
  0x35   : > { %881 = vmatmul.msk.bf16.gmra.mxu0 %vm337_vm1, %v903_v10  ;;  %885 = vmatmul.msk.bf16.gmra.mxu1 %vm337_vm1, %v907_v11 }
  0x36   : > { %889 = vmatmul.msk.bf16.gmra.mxu2 %vm337_vm1, %v911_v12  ;;  %893 = vmatmul.msk.bf16.gmra.mxu3 %vm337_vm1, %v915_v13 }
  0x45   : > { %882 = vmatmul.msk.bf16.gmra.mxu0 %vm337_vm1, %v904_v14  ;;  %886 = vmatmul.msk.bf16.gmra.mxu1 %vm337_vm1, %v908_v15 }
  0x46   : > { %890 = vmatmul.msk.bf16.gmra.mxu2 %vm337_vm1, %v912_v16  ;;  %894 = vmatmul.msk.bf16.gmra.mxu3 %vm337_vm1, %v916_v17 }
  0x55   : > { %883 = vmatmul.msk.bf16.gmra.mxu0 %vm337_vm1, %v905_v18  ;;  %887 = vmatmul.msk.bf16.gmra.mxu1 %vm337_vm1, %v909_v19 }
  0x56   : > { %891 = vmatmul.msk.bf16.gmra.mxu2 %vm337_vm1, %v913_v20  ;;  %895 = vmatmul.msk.bf16.gmra.mxu3 %vm337_vm1, %v917_v21 }
  0xa2   : > { %v399_v23 = vpop.f32.mrf.mxu0  ;;  %v419_v24 = vpop.f32.mrf.mxu1 }
  0xa3   : > { %v400_v25 = vadd.f32 %v1291_v22, %v399_v23  ;;  %v420_v26 = vadd.f32 %v1291_v22, %v419_v24 }
  0xa5   : > { %v479_v27 = vadd.f32 3.0, %v400_v25  ;;  %v487_v28 = vadd.f32 3.0, %v420_v26 }
  0xa7   : > { %v511_v29 = vmax.f32 %v479_v27, 0.0  ;;  %v519_v30 = vmax.f32 %v487_v28, 0.0 }
  0xa9   : > { %v439_v31 = vpop.f32.mrf.mxu2  ;;  %v459_v32 = vpop.f32.mrf.mxu3  ;;  %v543_v33 = vmin.f32 %v511_v29, 6.0  ;;  %v551_v40 = vmin.f32 %v519_v30, 6.0 }
  0xaa   : > { %v440_v34 = vadd.f32 %v1291_v22, %v439_v31  ;;  %v460_v35 = vadd.f32 %v1291_v22, %v459_v32  ;;  %v401_v36 = vpop.f32.mrf.mxu0  ;;  %v421_v37 = vpop.f32.mrf.mxu1 }
  0xab   : > { %v402_v38 = vadd.f32 %v1291_v22, %v401_v36  ;;  %v422_v39 = vadd.f32 %v1291_v22, %v421_v37  ;;  %v575_v45 = vmul.f32 %v543_v33, %v400_v25  ;;  %v583_v50 = vmul.f32 %v551_v40, %v420_v26 }
  0xac   : > { %v495_v41 = vadd.f32 3.0, %v440_v34  ;;  %v503_v42 = vadd.f32 3.0, %v460_v35 }
  0xad   : > { %v480_v43 = vadd.f32 3.0, %v402_v38  ;;  %v488_v44 = vadd.f32 3.0, %v422_v39  ;;  %v607_v56 = vmul.f32 0.16666667, %v575_v45  ;;  %v615_v2 = vmul.f32 0.16666667, %v583_v50 }
  0xae   : > { %v527_v46 = vmax.f32 %v495_v41, 0.0  ;;  %v535_v47 = vmax.f32 %v503_v42, 0.0 }
  0xaf   : > { %v512_v48 = vmax.f32 %v480_v43, 0.0  ;;  %v520_v49 = vmax.f32 %v488_v44, 0.0 }
  0xb0   : > { %v559_v51 = vmin.f32 %v527_v46, 6.0  ;;  %v567_v57 = vmin.f32 %v535_v47, 6.0 }
  0xb1   : > { %v544_v52 = vmin.f32 %v512_v48, 6.0  ;;  %v552_v53 = vmin.f32 %v520_v49, 6.0  ;;  %v441_v54 = vpop.f32.mrf.mxu2  ;;  %v461_v55 = vpop.f32.mrf.mxu3 }
  0xb2   : > { %v442_v58 = vadd.f32 %v1291_v22, %v441_v54  ;;  %v462_v59 = vadd.f32 %v1291_v22, %v461_v55  ;;  %v404_v60 = vpop.f32.mrf.mxu0  ;;  %v424_v61 = vpop.f32.mrf.mxu1  ;;  %v591_v3 = vmul.f32 %v559_v51, %v440_v34  ;;  %v599_v10 = vmul.f32 %v567_v57, %v460_v35 }
  0xb3   : > { %v576_v62 = vmul.f32 %v544_v52, %v402_v38  ;;  %v584_v63 = vmul.f32 %v552_v53, %v422_v39  ;;  %v405_v0 = vadd.f32 %v1291_v22, %v404_v60  ;;  %v425_v1 = vadd.f32 %v1291_v22, %v424_v61 }
  0xb4   : > { %v496_v4 = vadd.f32 3.0, %v442_v58  ;;  %v504_v5 = vadd.f32 3.0, %v462_v59  ;;  %v623_v19 = vmul.f32 0.16666667, %v591_v3  ;;  %v631_v30 = vmul.f32 0.16666667, %v599_v10 }
  0xb5   : > { %v608_v6 = vmul.f32 0.16666667, %v576_v62  ;;  %v616_v7 = vmul.f32 0.16666667, %v584_v63  ;;  %v481_v8 = vadd.f32 3.0, %v405_v0  ;;  %v489_v9 = vadd.f32 3.0, %v425_v1 }
  0xb6   : > { %v528_v11 = vmax.f32 %v496_v4, 0.0  ;;  %v536_v12 = vmax.f32 %v504_v5, 0.0 }
  0xb7   : > { %v924_v13 = vpack.c.bf16 %v608_v6, %v607_v56  ;;  %v944_v14 = vpack.c.bf16 %v616_v7, %v615_v2  ;;  %v513_v15 = vmax.f32 %v481_v8, 0.0  ;;  %v521_v16 = vmax.f32 %v489_v9, 0.0 }
  0xb8   : > { %v560_v17 = vmin.f32 %v528_v11, 6.0  ;;  %v568_v18 = vmin.f32 %v536_v12, 6.0 }
  0xb9   : > { %925 = vst [vmem:[%s1306_s21] sm:$0xff] %v924_v13   ;;  %v545_v20 = vmin.f32 %v513_v15, 6.0  ;;  %v444_v21 = vpop.f32.mrf.mxu2  ;;  %v464_v23 = vpop.f32.mrf.mxu3  ;;  %v553_v31 = vmin.f32 %v521_v16, 6.0 }
  0xba   : > { %1004 = vst [vmem:[%s1306_s21 + $0x20] sm:$0xff] %v944_v14   ;;  %v592_v24 = vmul.f32 %v560_v17, %v442_v58  ;;  %v600_v25 = vmul.f32 %v568_v18, %v462_v59  ;;  %v445_v26 = vadd.f32 %v1291_v22, %v444_v21  ;;  %v465_v27 = vadd.f32 %v1291_v22, %v464_v23  ;;  %v406_v28 = vpop.f32.mrf.mxu0  ;;  %v426_v29 = vpop.f32.mrf.mxu1 }
  0xbb   : > { %v407_v32 = vadd.f32 %v1291_v22, %v406_v28  ;;  %v427_v33 = vadd.f32 %v1291_v22, %v426_v29  ;;  %v577_v38 = vmul.f32 %v545_v20, %v405_v0  ;;  %v585_v47 = vmul.f32 %v553_v31, %v425_v1 }
  0xbc   : > { %v624_v34 = vmul.f32 0.16666667, %v592_v24  ;;  %v632_v35 = vmul.f32 0.16666667, %v600_v25  ;;  %v497_v36 = vadd.f32 3.0, %v445_v26  ;;  %v505_v37 = vadd.f32 3.0, %v465_v27 }
  0xbd   : > { %v482_v39 = vadd.f32 3.0, %v407_v32  ;;  %v490_v40 = vadd.f32 3.0, %v427_v33  ;;  %v609_v53 = vmul.f32 0.16666667, %v577_v38  ;;  %v617_v63 = vmul.f32 0.16666667, %v585_v47 }
  0xbe   : > { %v964_v41 = vpack.c.bf16 %v624_v34, %v623_v19  ;;  %v984_v42 = vpack.c.bf16 %v632_v35, %v631_v30  ;;  %v529_v43 = vmax.f32 %v497_v36, 0.0  ;;  %v537_v44 = vmax.f32 %v505_v37, 0.0 }
  0xbf   : > { %v514_v45 = vmax.f32 %v482_v39, 0.0  ;;  %v522_v46 = vmax.f32 %v490_v40, 0.0 }
  0xc0   : > { %1008 = vst [vmem:[%s1306_s21 + $0x40] sm:$0xff] %v964_v41   ;;  %v561_v48 = vmin.f32 %v529_v43, 6.0  ;;  %v569_v54 = vmin.f32 %v537_v44, 6.0 }
  0xc1   : > { %1012 = vst [vmem:[%s1306_s21 + $0x60] sm:$0xff] %v984_v42   ;;  %v546_v49 = vmin.f32 %v514_v45, 6.0  ;;  %v554_v50 = vmin.f32 %v522_v46, 6.0  ;;  %v446_v51 = vpop.f32.mrf.mxu2  ;;  %v466_v52 = vpop.f32.mrf.mxu3 }
  0xc2   : > { %v447_v55 = vadd.f32 %v1291_v22, %v446_v51  ;;  %v467_v56 = vadd.f32 %v1291_v22, %v466_v52  ;;  %v409_v57 = vpop.f32.mrf.mxu0  ;;  %v429_v58 = vpop.f32.mrf.mxu1  ;;  %v593_v0 = vmul.f32 %v561_v48, %v445_v26  ;;  %v601_v7 = vmul.f32 %v569_v54, %v465_v27 }
  0xc3   : > { %v578_v59 = vmul.f32 %v546_v49, %v407_v32  ;;  %v586_v60 = vmul.f32 %v554_v50, %v427_v33  ;;  %v410_v61 = vadd.f32 %v1291_v22, %v409_v57  ;;  %v430_v62 = vadd.f32 %v1291_v22, %v429_v58 }
  0xc4   : > { %v498_v1 = vadd.f32 3.0, %v447_v55  ;;  %v506_v2 = vadd.f32 3.0, %v467_v56  ;;  %v625_v16 = vmul.f32 0.16666667, %v593_v0  ;;  %v633_v27 = vmul.f32 0.16666667, %v601_v7 }
  0xc5   : > { %v610_v3 = vmul.f32 0.16666667, %v578_v59  ;;  %v618_v4 = vmul.f32 0.16666667, %v586_v60  ;;  %v483_v5 = vadd.f32 3.0, %v410_v61  ;;  %v491_v6 = vadd.f32 3.0, %v430_v62 }
  0xc6   : > { %v530_v8 = vmax.f32 %v498_v1, 0.0  ;;  %v538_v9 = vmax.f32 %v506_v2, 0.0 }
  0xc7   : > { %v929_v10 = vpack.c.bf16 %v610_v3, %v609_v53  ;;  %v949_v11 = vpack.c.bf16 %v618_v4, %v617_v63  ;;  %v515_v12 = vmax.f32 %v483_v5, 0.0  ;;  %v523_v13 = vmax.f32 %v491_v6, 0.0 }
  0xc8   : > { %v562_v14 = vmin.f32 %v530_v8, 6.0  ;;  %v570_v15 = vmin.f32 %v538_v9, 6.0 }
  0xc9   : > { %1001 = vst [vmem:[%s1306_s21 + $0x8] sm:$0xff] %v929_v10   ;;  %v547_v17 = vmin.f32 %v515_v12, 6.0  ;;  %v449_v18 = vpop.f32.mrf.mxu2  ;;  %v469_v19 = vpop.f32.mrf.mxu3  ;;  %v555_v28 = vmin.f32 %v523_v13, 6.0 }
  0xca   : > { %1005 = vst [vmem:[%s1306_s21 + $0x28] sm:$0xff] %v949_v11   ;;  %v594_v20 = vmul.f32 %v562_v14, %v447_v55  ;;  %v602_v21 = vmul.f32 %v570_v15, %v467_v56  ;;  %v450_v23 = vadd.f32 %v1291_v22, %v449_v18  ;;  %v470_v24 = vadd.f32 %v1291_v22, %v469_v19  ;;  %v411_v25 = vpop.f32.mrf.mxu0  ;;  %v431_v26 = vpop.f32.mrf.mxu1 }
  0xcb   : > { %v412_v29 = vadd.f32 %v1291_v22, %v411_v25  ;;  %v432_v30 = vadd.f32 %v1291_v22, %v431_v26  ;;  %v579_v35 = vmul.f32 %v547_v17, %v410_v61  ;;  %v587_v44 = vmul.f32 %v555_v28, %v430_v62 }
  0xcc   : > { %v626_v31 = vmul.f32 0.16666667, %v594_v20  ;;  %v634_v32 = vmul.f32 0.16666667, %v602_v21  ;;  %v499_v33 = vadd.f32 3.0, %v450_v23  ;;  %v507_v34 = vadd.f32 3.0, %v470_v24 }
  0xcd   : > { %v484_v36 = vadd.f32 3.0, %v412_v29  ;;  %v492_v37 = vadd.f32 3.0, %v432_v30  ;;  %v611_v50 = vmul.f32 0.16666667, %v579_v35  ;;  %v619_v60 = vmul.f32 0.16666667, %v587_v44 }
  0xce   : > { %v969_v38 = vpack.c.bf16 %v626_v31, %v625_v16  ;;  %v989_v39 = vpack.c.bf16 %v634_v32, %v633_v27  ;;  %v531_v40 = vmax.f32 %v499_v33, 0.0  ;;  %v539_v41 = vmax.f32 %v507_v34, 0.0 }
  0xcf   : > { %v516_v42 = vmax.f32 %v484_v36, 0.0  ;;  %v524_v43 = vmax.f32 %v492_v37, 0.0 }
  0xd0   : > { %1009 = vst [vmem:[%s1306_s21 + $0x48] sm:$0xff] %v969_v38   ;;  %v563_v45 = vmin.f32 %v531_v40, 6.0  ;;  %v571_v51 = vmin.f32 %v539_v41, 6.0 }
  0xd1   : > { %1013 = vst [vmem:[%s1306_s21 + $0x68] sm:$0xff] %v989_v39   ;;  %v548_v46 = vmin.f32 %v516_v42, 6.0  ;;  %v556_v47 = vmin.f32 %v524_v43, 6.0  ;;  %v451_v48 = vpop.f32.mrf.mxu2  ;;  %v471_v49 = vpop.f32.mrf.mxu3 }
  0xd2   : > { %v452_v52 = vadd.f32 %v1291_v22, %v451_v48  ;;  %v472_v53 = vadd.f32 %v1291_v22, %v471_v49  ;;  %v414_v54 = vpop.f32.mrf.mxu0  ;;  %v434_v55 = vpop.f32.mrf.mxu1  ;;  %v595_v61 = vmul.f32 %v563_v45, %v450_v23  ;;  %v603_v6 = vmul.f32 %v571_v51, %v470_v24 }
  0xd3   : > { %v580_v56 = vmul.f32 %v548_v46, %v412_v29  ;;  %v588_v57 = vmul.f32 %v556_v47, %v432_v30  ;;  %v415_v58 = vadd.f32 %v1291_v22, %v414_v54  ;;  %v435_v59 = vadd.f32 %v1291_v22, %v434_v55 }
  0xd4   : > { %v500_v62 = vadd.f32 3.0, %v452_v52  ;;  %v508_v63 = vadd.f32 3.0, %v472_v53  ;;  %v627_v12 = vmul.f32 0.16666667, %v595_v61  ;;  %v635_v23 = vmul.f32 0.16666667, %v603_v6 }
  0xd5   : > { %v612_v0 = vmul.f32 0.16666667, %v580_v56  ;;  %v620_v1 = vmul.f32 0.16666667, %v588_v57  ;;  %v485_v2 = vadd.f32 3.0, %v415_v58  ;;  %v493_v3 = vadd.f32 3.0, %v435_v59 }
  0xd6   : > { %v532_v4 = vmax.f32 %v500_v62, 0.0  ;;  %v540_v5 = vmax.f32 %v508_v63, 0.0 }
  0xd7   : > { %v934_v7 = vpack.c.bf16 %v612_v0, %v611_v50  ;;  %v954_v8 = vpack.c.bf16 %v620_v1, %v619_v60  ;;  %v517_v9 = vmax.f32 %v485_v2, 0.0  ;;  %v525_v13 = vmax.f32 %v493_v3, 0.0 }
  0xd8   : > { %v564_v10 = vmin.f32 %v532_v4, 6.0  ;;  %v572_v11 = vmin.f32 %v540_v5, 6.0 }
  0xd9   : > { %1002 = vst [vmem:[%s1306_s21 + $0x10] sm:$0xff] %v934_v7   ;;  %v454_v14 = vpop.f32.mrf.mxu2  ;;  %v474_v15 = vpop.f32.mrf.mxu3  ;;  %v549_v24 = vmin.f32 %v517_v9, 6.0  ;;  %v557_v31 = vmin.f32 %v525_v13, 6.0 }
  0xda   : > { %1006 = vst [vmem:[%s1306_s21 + $0x30] sm:$0xff] %v954_v8   ;;  %v596_v16 = vmul.f32 %v564_v10, %v452_v52  ;;  %v604_v17 = vmul.f32 %v572_v11, %v472_v53  ;;  %v455_v18 = vadd.f32 %v1291_v22, %v454_v14  ;;  %v475_v19 = vadd.f32 %v1291_v22, %v474_v15  ;;  %v416_v20 = vpop.f32.mrf.mxu0  ;;  %v436_v21 = vpop.f32.mrf.mxu1 }
  0xdb   : > { %v417_v25 = vadd.f32 %v1291_v22, %v416_v20  ;;  %v437_v26 = vadd.f32 %v1291_v22, %v436_v21  ;;  %v581_v39 = vmul.f32 %v549_v24, %v415_v58  ;;  %v589_v41 = vmul.f32 %v557_v31, %v435_v59 }
  0xdc   : > { %v628_v27 = vmul.f32 0.16666667, %v596_v16  ;;  %v636_v28 = vmul.f32 0.16666667, %v604_v17  ;;  %v501_v29 = vadd.f32 3.0, %v455_v18  ;;  %v509_v30 = vadd.f32 3.0, %v475_v19 }
  0xdd   : > { %v486_v32 = vadd.f32 3.0, %v417_v25  ;;  %v494_v33 = vadd.f32 3.0, %v437_v26  ;;  %v613_v51 = vmul.f32 0.16666667, %v581_v39  ;;  %v621_v55 = vmul.f32 0.16666667, %v589_v41 }
  0xde   : > { %v974_v34 = vpack.c.bf16 %v628_v27, %v627_v12  ;;  %v994_v35 = vpack.c.bf16 %v636_v28, %v635_v23  ;;  %v533_v36 = vmax.f32 %v501_v29, 0.0  ;;  %v541_v40 = vmax.f32 %v509_v30, 0.0 }
  0xdf   : > { %v518_v37 = vmax.f32 %v486_v32, 0.0  ;;  %v526_v38 = vmax.f32 %v494_v33, 0.0 }
  0xe0   : > { %1010 = vst [vmem:[%s1306_s21 + $0x50] sm:$0xff] %v974_v34   ;;  %v565_v48 = vmin.f32 %v533_v36, 6.0  ;;  %v573_v52 = vmin.f32 %v541_v40, 6.0 }
  0xe1   : > { %1014 = vst [vmem:[%s1306_s21 + $0x70] sm:$0xff] %v994_v35   ;;  %v550_v42 = vmin.f32 %v518_v37, 6.0  ;;  %v558_v43 = vmin.f32 %v526_v38, 6.0  ;;  %v456_v44 = vpop.f32.mrf.mxu2  ;;  %v476_v45 = vpop.f32.mrf.mxu3 }
  0xe2   : > { %v457_v46 = vadd.f32 %v1291_v22, %v456_v44  ;;  %v477_v47 = vadd.f32 %v1291_v22, %v476_v45  ;;  %v597_v60 = vmul.f32 %v565_v48, %v455_v18  ;;  %v605_v22 = vmul.f32 %v573_v52, %v475_v19 }
  0xe3   : > { %v582_v49 = vmul.f32 %v550_v42, %v417_v25  ;;  %v590_v50 = vmul.f32 %v558_v43, %v437_v26 }
  0xe4   : > { %v502_v53 = vadd.f32 3.0, %v457_v46  ;;  %v510_v54 = vadd.f32 3.0, %v477_v47  ;;  %v629_v3 = vmul.f32 0.16666667, %v597_v60  ;;  %v637_v4 = vmul.f32 0.16666667, %v605_v22 }
  0xe5   : > { %v614_v56 = vmul.f32 0.16666667, %v582_v49  ;;  %v622_v57 = vmul.f32 0.16666667, %v590_v50 }
  0xe6   : > { %v534_v58 = vmax.f32 %v502_v53, 0.0  ;;  %v542_v59 = vmax.f32 %v510_v54, 0.0 }
  0xe7   : > { %v939_v61 = vpack.c.bf16 %v614_v56, %v613_v51  ;;  %v959_v62 = vpack.c.bf16 %v622_v57, %v621_v55 }
  0xe8   : > { %v566_v63 = vmin.f32 %v534_v58, 6.0  ;;  %v574_v0 = vmin.f32 %v542_v59, 6.0 }
  0xe9   : > { %1003 = vst [vmem:[%s1306_s21 + $0x18] sm:$0xff] %v939_v61  }
  0xea   : > { %1007 = vst [vmem:[%s1306_s21 + $0x38] sm:$0xff] %v959_v62   ;;  %v598_v1 = vmul.f32 %v566_v63, %v457_v46  ;;  %v606_v2 = vmul.f32 %v574_v0, %v477_v47 }
  0xec   : > { %v630_v5 = vmul.f32 0.16666667, %v598_v1  ;;  %v638_v6 = vmul.f32 0.16666667, %v606_v2 }
  0xee   : > { %v979_v7 = vpack.c.bf16 %v630_v5, %v629_v3  ;;  %v999_v8 = vpack.c.bf16 %v638_v6, %v637_v4 }
  0xf0   : > { %1011 = vst [vmem:[%s1306_s21 + $0x58] sm:$0xff] %v979_v7  }
  0xf1   : > { %1015 = vst [vmem:[%s1306_s21 + $0x78] sm:$0xff] %v999_v8  }
  0xf2   : > { %1110 = shalt.err (!%p1107_p5)
}
  0xf3   : > { %s1163_s11 = smov 64   ;;  %s1164_s18 = smov 4  }
  0xf4   : > { %1025 = dma.vmem_to_hbm [thread:$0]  (%p1225_p4), %s719_s15, 2048, %s721_s29, %s704_s30, %s1163_s11, %s1163_s11, %s1164_s18  }
  0xf5 PF: > { %p1031_p6 = scmp.ge.s32.totalorder %s1161_s17, 2  ;;  %s735_s19 = sand.u32 1, %s1141_s12  }
  0xf6   : > { %s736_s21 = scalar_lea.sflag [#allocation3], %s735_s19 }
  0xf7   : > { %p1028_p7 = pnand %p1031_p6, %p1232_p8 }
  0xf9   : > { %p1029_p9 = pneg %p1028_p7 }
  0xfb   : > { %1136 = dma.done.wait (%p1029_p9), %s736_s21, 2048  }
  0xfc   : > { %1138 = vsyncadd (%p1029_p9), %s736_s21, 4294965248  ;;  %s16_s17 = sadd.s32 1, %s1161_s17   ;;  %s1391_s12 = smov %s1145_s13 }
  0xfd   : > { %p13_p10 = scmp.ge.s32.totalorder %s16_s17, 4   ;;  %s1392_s13 = smov %s1149_s14 }
  0xfe   : > { %s1393_s14 = smov %s1238_s25  ;;  %s1394_s15 = smov %s1157_s16 }
  0xff   : > { %s1395_s16 = smov %s1397_s20  ;;  %15 = sbr.rel (!%p13_p10) target bundleno = 4 (0x4), region = 67 }
 0x104   :  { %742 = vsyncpa [#allocation3], 1 }
 0x105   :  { %744 = vsyncpa [#allocation3 + $0x1], 1 }

</bundles_post_ra>
